<compile_context>
chip_gen: v5e
topology: v5e:2x2
jax: 0.10.0
libtpu: 0.0.40
codegen_flags: <defaults>
</compile_context>

<pallas_src>
from functools import partial

import jax
import jax.numpy as jnp
from jax.experimental import pallas as pl
from jax.experimental.pallas import tpu as pltpu


def conv_maska_bn_kernel(w_ref, p_ref, gamma_ref, beta_ref, o_ref, *, eps):
    # w_ref:     (Cout, K)   masked conv weights, im2col layout (K = Cin*KH*KW)
    # p_ref:     (K, M)      im2col patches, M = N*Ho*Wo in the lane dim
    # gamma_ref: (Cout, 1), beta_ref: (Cout, 1)
    # o_ref:     (Cout, M)   lane-dense output slab
    acc = jnp.dot(w_ref[...], p_ref[...],
                  preferred_element_type=jnp.float32)          # (Cout, M)

    # BatchNorm2d, training mode: biased batch stats over (N, H, W) = lane axis
    mean = jnp.mean(acc, axis=1, keepdims=True)                # (Cout, 1)
    centered = acc - mean
    var = jnp.mean(centered * centered, axis=1, keepdims=True)  # (Cout, 1)

    # fused affine: y = acc * scale + shift
    scale = gamma_ref[...] * jax.lax.rsqrt(var + eps)          # (Cout, 1)
    shift = beta_ref[...] - mean * scale                       # (Cout, 1)
    o_ref[...] = (acc * scale + shift).astype(o_ref.dtype)


def make_mask_a(out_c, in_c, KH, KW):
    mask = jnp.ones((out_c, in_c, KH, KW), jnp.float32)
    mask = mask.at[:, :, KH // 2, KW // 2:].set(0.0)   # center row: center col onward
    mask = mask.at[:, :, KH // 2 + 1:, :].set(0.0)     # rows below center
    return mask


def conv_maska_block(x_nchw, weight_oihw, gamma, beta, *, stride, pad, eps=1e-5):
    N, Cin, H, W = x_nchw.shape
    Cout, _, KH, KW = weight_oihw.shape
    K = Cin * KH * KW

    # ---- parameter setup (glue): apply type-A mask, flatten to (Cout, K) ----
    w2 = (weight_oihw * make_mask_a(Cout, Cin, KH, KW)) \
        .reshape(Cout, K).astype(jnp.float32)

    # ---- im2col in the wrapper (fuses with pad/transpose in XLA) ----
    x_p = jnp.pad(x_nchw.astype(jnp.float32),
                  ((0, 0), (0, 0), (pad, pad), (pad, pad)))
    Hp, Wp = H + 2 * pad, W + 2 * pad
    Ho = (Hp - KH) // stride + 1
    Wo = (Wp - KW) // stride + 1
    M = N * Ho * Wo

    taps = []
    for kh in range(KH):
        for kw in range(KW):
            taps.append(x_p[:, :,
                            kh:kh + (Ho - 1) * stride + 1:stride,
                            kw:kw + (Wo - 1) * stride + 1:stride])  # (N,Cin,Ho,Wo)
    # (KH*KW, N, Cin, Ho, Wo) -> (Cin, KH*KW, N, Ho, Wo) -> (K, M)
    # K ordering (cin, kh, kw) matches weight.reshape(Cout, Cin*KH*KW).
    p_t = jnp.stack(taps, axis=0).transpose(2, 0, 1, 3, 4).reshape(K, M)

    # explicit VMEM budget (gridless, whole-array residency), generous headroom
    data_bytes = 4 * (w2.size + p_t.size + Cout * M + 2 * Cout)
    vmem_limit = int(min(max(2 * data_bytes + (1 << 20), 4 << 20), 64 << 20))

    kern = partial(conv_maska_bn_kernel, eps=eps)
    out_cm = pl.pallas_call(
        kern,
        out_shape=jax.ShapeDtypeStruct((Cout, M), jnp.float32),
        in_specs=[pl.BlockSpec(memory_space=pltpu.MemorySpace.VMEM)] * 4,
        out_specs=pl.BlockSpec(memory_space=pltpu.MemorySpace.VMEM),
        compiler_params=pltpu.CompilerParams(vmem_limit_bytes=vmem_limit),
    )(w2, p_t,
      gamma.reshape(Cout, 1).astype(jnp.float32),
      beta.reshape(Cout, 1).astype(jnp.float32))

    # (Cout, M) -> (Cout, N, Ho, Wo) -> NCHW  (layout glue in XLA)
    return out_cm.reshape(Cout, N, Ho, Wo).transpose(1, 0, 2, 3)


def reference(x_nchw, weight_oihw, gamma, beta, *, stride, pad, eps=1e-5):
    Cout, Cin, KH, KW = weight_oihw.shape
    wm = weight_oihw * make_mask_a(Cout, Cin, KH, KW)
    y = jax.lax.conv_general_dilated(
        x_nchw, wm, window_strides=(stride, stride),
        padding=[(pad, pad), (pad, pad)],
        dimension_numbers=('NCHW', 'OIHW', 'NCHW'))
    mean = y.mean(axis=(0, 2, 3), keepdims=True)
    var = ((y - mean) ** 2).mean(axis=(0, 2, 3), keepdims=True)
    return ((y - mean) * jax.lax.rsqrt(var + eps)
            * gamma.reshape(1, -1, 1, 1) + beta.reshape(1, -1, 1, 1))


if __name__ == "__main__":
    # Small shapes consistent with the module: in=4, out=8, kernel=3, stride=1, pad=1
    N, Cin, H, W = 2, 4, 16, 16
    Cout, KH, KW = 8, 3, 3
    stride, pad = 1, 1

    key = jax.random.PRNGKey(0)
    kx, kw = jax.random.split(key)
    x = jax.random.normal(kx, (N, Cin, H, W), dtype=jnp.float32)
    # deterministic conv weight (Conv2d shape: (out, in, KH, KW), bias=False)
    weight = 0.1 * jax.random.normal(kw, (Cout, Cin, KH, KW), dtype=jnp.float32)
    # BatchNorm2d default affine init: gamma=1, beta=0
    gamma = jnp.ones((Cout,), jnp.float32)
    beta = jnp.zeros((Cout,), jnp.float32)

    out = conv_maska_block(x, weight, gamma, beta, stride=stride, pad=pad)
    out = jax.block_until_ready(out)

    ref = reference(x, weight, gamma, beta, stride=stride, pad=pad)
    assert out.shape == (N, Cout, H, W)
    assert jnp.allclose(out, ref, rtol=1e-4, atol=1e-4), \
        f"max abs err {jnp.max(jnp.abs(out - ref))}"

    print("KERNEL_OK")
</pallas_src>

<mosaic_0001>
module attributes {stable_mosaic.version = 11 : i64} {
  func.func @conv_maska_bn_kernel(%arg0: memref<8x36xf32, #tpu.memory_space<vmem>>, %arg1: memref<36x512xf32, #tpu.memory_space<vmem>>, %arg2: memref<8x1xf32, #tpu.memory_space<vmem>>, %arg3: memref<8x1xf32, #tpu.memory_space<vmem>>, %arg4: memref<8x512xf32, #tpu.memory_space<vmem>>) attributes {dimension_semantics = [], scalar_prefetch = 0 : i64, scratch_operands = 0 : i64, tpu.core_type = #tpu.core_type<tc>} {
    %c0 = arith.constant 0 : index
    %c0_0 = arith.constant 0 : index
    %0 = vector.load %arg0[%c0, %c0_0] : memref<8x36xf32, #tpu.memory_space<vmem>>, vector<8x36xf32>
    %c0_1 = arith.constant 0 : index
    %c0_2 = arith.constant 0 : index
    %1 = vector.load %arg1[%c0_1, %c0_2] : memref<36x512xf32, #tpu.memory_space<vmem>>, vector<36x512xf32>
    %cst = arith.constant dense<0.000000e+00> : vector<8x512xf32>
    %2 = tpu.matmul %0, %1, %cst {dimension_numbers = #tpu.dot_dimension_numbers<[1], [0], [0], [1], [0, 0, 1, 1], [], []>} : vector<8x36xf32>, vector<36x512xf32>, vector<8x512xf32> -> vector<8x512xf32>
    %cst_3 = arith.constant dense<0.000000e+00> : vector<8xf32>
    %3 = vector.multi_reduction <add>, %2, %cst_3 [1] : vector<8x512xf32> to vector<8xf32>
    %4 = vector.shape_cast %3 : vector<8xf32> to vector<8x1xf32>
    %cst_4 = arith.constant 5.120000e+02 : f32
    %5 = vector.broadcast %cst_4 : f32 to vector<8x1xf32>
    %6 = arith.divf %4, %5 : vector<8x1xf32>
    %7 = vector.broadcast %6 : vector<8x1xf32> to vector<8x512xf32>
    %8 = arith.subf %2, %7 : vector<8x512xf32>
    %9 = arith.mulf %8, %8 : vector<8x512xf32>
    %cst_5 = arith.constant dense<0.000000e+00> : vector<8xf32>
    %10 = vector.multi_reduction <add>, %9, %cst_5 [1] : vector<8x512xf32> to vector<8xf32>
    %11 = vector.shape_cast %10 : vector<8xf32> to vector<8x1xf32>
    %cst_6 = arith.constant 5.120000e+02 : f32
    %12 = vector.broadcast %cst_6 : f32 to vector<8x1xf32>
    %13 = arith.divf %11, %12 : vector<8x1xf32>
    %c0_7 = arith.constant 0 : index
    %c0_8 = arith.constant 0 : index
    %14 = vector.load %arg2[%c0_7, %c0_8] : memref<8x1xf32, #tpu.memory_space<vmem>>, vector<8x1xf32>
    %cst_9 = arith.constant 9.99999974E-6 : f32
    %15 = vector.broadcast %cst_9 : f32 to vector<8x1xf32>
    %16 = arith.addf %13, %15 : vector<8x1xf32>
    %17 = math.rsqrt %16 : vector<8x1xf32>
    %18 = arith.mulf %14, %17 : vector<8x1xf32>
    %c0_10 = arith.constant 0 : index
    %c0_11 = arith.constant 0 : index
    %19 = vector.load %arg3[%c0_10, %c0_11] : memref<8x1xf32, #tpu.memory_space<vmem>>, vector<8x1xf32>
    %20 = arith.mulf %6, %18 : vector<8x1xf32>
    %21 = arith.subf %19, %20 : vector<8x1xf32>
    %22 = vector.broadcast %18 : vector<8x1xf32> to vector<8x512xf32>
    %23 = arith.mulf %2, %22 : vector<8x512xf32>
    %24 = vector.broadcast %21 : vector<8x1xf32> to vector<8x512xf32>
    %25 = arith.addf %23, %24 : vector<8x512xf32>
    %c0_12 = arith.constant 0 : index
    %c0_13 = arith.constant 0 : index
    %26 = vector.load %arg4[%c0_12, %c0_13] : memref<8x512xf32, #tpu.memory_space<vmem>>, vector<8x512xf32>
    tpu.vector_store %arg4[%c0_12, %c0_13], %25 {strides = array<i32>} : memref<8x512xf32, #tpu.memory_space<vmem>>, vector<8x512xf32>,
    return
  }
}

</mosaic_0001>

<bundles_post_ra>
// kernel: tpu_custom_call.1
= control target key start
LH: loop header
LB: loop body
LE: loop exit
PB: predicated region body
PF: predicated region fallthrough
CT: control target
= control target key end

     0   :  { %9 = vsyncpa [#allocation3], 0  ;;  %s352_s0 = inlined_call_operand.vmem [shape: f32[8,36], index: 0, kind: input, shape index: {}]   ;;  %s353_s1 = inlined_call_operand.hbm [shape: f32[36,512], index: 1, kind: input, shape index: {}]   ;;  %s354_s2 = inlined_call_operand.vmem [shape: f32[8,1], index: 2, kind: input, shape index: {}]   ;;  %s355_s3 = inlined_call_operand.vmem [shape: f32[8,1], index: 3, kind: input, shape index: {}]   ;;  %s356_s4 = inlined_call_operand.hbm [shape: f32[8,512], index: 4, kind: output, shape index: {}]  }
   0x1   :  { %10 = vsyncpa [#allocation4], 0  ;;  %s17_s17 = sshll.u32 %s353_s1, 4  ;;  %s306_s18 = smov [#allocation2]   ;;  %s18_s17 = int_to_ptr.hbm [resolvable:$true] %s17_s17 }
   0x2   :  { %s19_s19 = sshll.u32 %s306_s18, 4  ;;  %s307_s20 = smov 512   ;;  %s20_s19 = int_to_ptr.vmem [resolvable:$true] %s19_s19 }
   0x3   :  { %s308_s21 = smov 32  }
   0x4   :  { %25 = dma.hbm_to_vmem [thread:$0]  %s18_s17, 2560, %s20_s19, [#allocation3], %s307_s20, %s307_s20, %s308_s21  }
   0x5   :  { %302 = dma.done.wait [#allocation3], 2560  }
   0x6   :  { %303 = vsyncadd [#allocation3], 4294964736  ;;  %vm59_vm0 = vcmask 1043456   ;;  %v53_v0 = vld [vmem:[#allocation2 + $0x90] sm:$0xf]  ;;  %v50_v6 = vld [vmem:[#allocation2 + $0x78] sm:$0xff] }
   0x7   :  { %v49_v1 = vld [vmem:[#allocation2 + $0x70] sm:$0xff]  ;;  %v54_v2 = vld [vmem:[#allocation2 + $0x98] sm:$0xf]  ;;  %238 = vmatpush.msk.msra.mxu2 %vm59_vm0, %v53_v0  ;;  %v51_v3 = vld [vmem:[#allocation2 + $0x80] sm:$0xf]  ;;  %vm55_vm1 = vcmask 293888  }
   0x8   :  { %240 = vmatpush.msk.msra.mxu3 %vm59_vm0, %v54_v2  ;;  %v52_v4 = vld [vmem:[#allocation2 + $0x88] sm:$0xf]  ;;  %v45_v5 = vld [vmem:[#allocation2 + $0x50] sm:$0xff]  ;;  %234 = vmatpush.msk.msra.mxu0 %vm59_vm0, %v51_v3  ;;  %v47_v7 = vld [vmem:[#allocation2 + $0x60] sm:$0xff]  ;;  %v309_v28 = vmov 512.0   ;;  %v310_v48 = vmov 0  }
   0x9   :  { %236 = vmatpush.msk.msra.mxu1 %vm59_vm0, %v52_v4  ;;  %v48_v8 = vld [vmem:[#allocation2 + $0x68] sm:$0xff]  ;;  %124 = vmatpush.msra.mxu2 %v49_v1  ;;  %v46_v9 = vld [vmem:[#allocation2 + $0x58] sm:$0xff]  ;;  %v43_v10 = vld [vmem:[#allocation2 + $0x40] sm:$0xff]  ;;  %250 = vrcp.f32 %v309_v28  ;;  %s224_s29 = sshll.u32 %s356_s4, 4  ;;  %s225_s29 = int_to_ptr.hbm [resolvable:$true] %s224_s29 }
   0xa   :  { %144 = vmatpush.msra.mxu3 %v50_v6  ;;  %84 = vmatpush.msra.mxu0 %v47_v7  ;;  %v41_v11 = vld [vmem:[#allocation2 + $0x30] sm:$0xff]  ;;  %v44_v12 = vld [vmem:[#allocation2 + $0x48] sm:$0xff]  ;;  %v42_v13 = vld [vmem:[#allocation2 + $0x38] sm:$0xff] }
   0xb   :  { %104 = vmatpush.msra.mxu1 %v48_v8  ;;  %125 = vmatpush.msra.mxu2 %v45_v5  ;;  %v39_v14 = vld [vmem:[#allocation2 + $0x20] sm:$0xff]  ;;  %v40_v15 = vld [vmem:[#allocation2 + $0x28] sm:$0xff]  ;;  %v37_v16 = vld [vmem:[#allocation2 + $0x10] sm:$0xff] }
   0xc   :  { %145 = vmatpush.msra.mxu3 %v46_v9  ;;  %85 = vmatpush.msra.mxu0 %v43_v10  ;;  %v38_v17 = vld [vmem:[#allocation2 + $0x18] sm:$0xff]  ;;  %v34_v18 = vld [vmem:[%s352_s0] sm:$0xff]  ;;  %v36_v20 = vld [vmem:[#allocation2 + $0x8] sm:$0xff] }
   0xd   :  { %105 = vmatpush.msra.mxu1 %v44_v12  ;;  %126 = vmatpush.msra.mxu2 %v41_v11  ;;  %v35_v19 = vld [vmem:[#allocation2] sm:$0xff] }
   0xe   :  { %146 = vmatpush.msra.mxu3 %v42_v13  ;;  %86 = vmatpush.msra.mxu0 %v39_v14  ;;  %v179_v57 = vld [vmem:[%s354_s2] sm:$0xff]  ;;  %s311_s2 = smov [#allocation5]  }
   0xf   :  { %106 = vmatpush.msra.mxu1 %v40_v15  ;;  %127 = vmatpush.msra.mxu2 %v37_v16  ;;  %v251_v29 = vpop.eup %250  ;;  %v192_v62 = vld [vmem:[%s355_s3] sm:$0xff]  ;;  %s222_s26 = sshll.u32 %s311_s2, 4  ;;  %s223_s26 = int_to_ptr.vmem [resolvable:$true] %s222_s26 }
  0x10   :  { %147 = vmatpush.msra.mxu3 %v38_v17  ;;  %239 = vmatmul.msk.f32.vlgmr.msra.gmra.mxu2 %vm55_vm1, %v34_v18  ;;  %v158_v30 = vmul.f32 512.0, %v251_v29  ;;  %vm162_vm2 = vweird.f32 %v251_v29 }
  0x11   :  { %241 = vmatmul.msk.f32.vlgmr.msra.gmra.mxu3 %vm55_vm1, %v34_v18  ;;  %87 = vmatpush.msra.mxu0 %v35_v19 }
  0x12   :  { %107 = vmatpush.msra.mxu1 %v36_v20  ;;  %235 = vmatmul.msk.f32.vlgmr.msra.gmra.mxu0 %vm55_vm1, %v34_v18  ;;  %v159_v31 = vsub.f32 1.0, %v158_v30 }
  0x13   :  { %237 = vmatmul.msk.f32.vlgmr.msra.gmra.mxu1 %vm55_vm1, %v34_v18  ;;  %248 = vset.pattern.permute.xlu1 %v310_v48 }
  0x14   :  { %v160_v32 = vmul.f32 %v251_v29, %v159_v31  ;;  %249 = vset.pattern.permute.xlu0 %v310_v48 }
  0x16   :  { %v161_v33 = vadd.f32 %v251_v29, %v160_v32 }
  0x18   :  { %v163_v34 = vsel %vm162_vm2, %v251_v29, %v161_v33 }
  0x8f   :  { %v89_v21 = vpop.f32.mrf.mxu0 }
  0x90   :  { %v109_v22 = vpop.f32.mrf.mxu1 }
  0x91   :  { %v152_v23 = vadd.f32 %v109_v22, %v89_v21 }
  0x93   :  { %v129_v24 = vpop.f32.mrf.mxu2 }
  0x94   :  { %v149_v25 = vpop.f32.mrf.mxu3  ;;  %v153_v26 = vadd.f32 %v152_v23, %v129_v24 }
  0x96   :  { %v154_v27 = vadd.f32 %v153_v26, %v149_v25 }
  0x98   :  { %155 = vadd.xlane.f32.xlu0 %v154_v27 }
 0x10b   :  { %v156_v35 = vpop.xlane.xlu0 %155 }
 0x10c   :  { %v164_v36 = vmul.f32 %v163_v34, %v156_v35 }
 0x10e   :  { %v165_v37 = vsub.f32 %v89_v21, %v164_v36  ;;  %v166_v38 = vsub.f32 %v109_v22, %v164_v36  ;;  %v167_v39 = vsub.f32 %v129_v24, %v164_v36  ;;  %v168_v40 = vsub.f32 %v149_v25, %v164_v36 }
 0x110   :  { %v169_v41 = vmul.f32 %v165_v37, %v165_v37  ;;  %v170_v42 = vmul.f32 %v166_v38, %v166_v38  ;;  %v171_v43 = vmul.f32 %v167_v39, %v167_v39  ;;  %v172_v45 = vmul.f32 %v168_v40, %v168_v40 }
 0x112   :  { %v173_v44 = vadd.f32 %v170_v42, %v169_v41 }
 0x114   :  { %v174_v46 = vadd.f32 %v173_v44, %v171_v43 }
 0x116   :  { %v175_v47 = vadd.f32 %v174_v46, %v172_v45 }
 0x118   :  { %176 = vadd.xlane.f32.xlu0 %v175_v47 }
 0x18b   :  { %v177_v49 = vpop.xlane.xlu0 %176 }
 0x18c   :  { %v178_v50 = vmul.f32 %v177_v49, %v163_v34 }
 0x18e   :  { %v180_v51 = vadd.f32 1e-05, %v178_v50 }
 0x190   :  { %252 = vrsqrt.f32 %v180_v51  ;;  %vm187_vm4 = vweird.f32 %v180_v51 }
 0x196   :  { %v253_v52 = vpop.eup %252 }
 0x197   :  { %v182_v53 = vmul.f32 %v253_v52, %v180_v51  ;;  %vm188_vm3 = vweird.f32 %v253_v52 }
 0x198   :  { %vm189_vm5 = vmor %vm187_vm4, %vm188_vm3 }
 0x199   :  { %v183_v54 = vmul.f32 %v253_v52, %v182_v53 }
 0x19b   :  { %v184_v55 = vmul.f32 0.5, %v183_v54 }
 0x19d   :  { %v185_v56 = vsub.f32 1.5, %v184_v55 }
 0x19f   :  { %v186_v58 = vmul.f32 %v253_v52, %v185_v56 }
 0x1a1   :  { %v190_v59 = vsel %vm189_vm5, %v253_v52, %v186_v58 }
 0x1a2   :  { %v191_v60 = vmul.f32 %v190_v59, %v179_v57 }
 0x1a4   :  { %197 = vperm.xlu1 %248, %v191_v60   ;;  %v193_v61 = vmul.f32 %v191_v60, %v164_v36 }
 0x1a6   :  { %v194_v63 = vsub.f32 %v192_v62, %v193_v61 }
 0x1ac   :  { %206 = vperm.xlu1 %248, %v194_v63  }
 0x216   :  { %v198_v0 = vpop.permute.xlu1 %197 }
 0x217   :  { %v200_v1 = vmul.f32 %v198_v0, %v89_v21  ;;  %v201_v2 = vmul.f32 %v198_v0, %v109_v22  ;;  %v202_v3 = vmul.f32 %v198_v0, %v129_v24  ;;  %v203_v4 = vmul.f32 %v198_v0, %v149_v25 }
 0x21e   :  { %v207_v5 = vpop.permute.xlu1 %206 }
 0x21f   :  { %v209_v6 = vadd.f32 %v207_v5, %v200_v1  ;;  %v210_v7 = vadd.f32 %v207_v5, %v201_v2  ;;  %v211_v8 = vadd.f32 %v207_v5, %v202_v3  ;;  %v212_v9 = vadd.f32 %v207_v5, %v203_v4 }
 0x221   :  { %213 = vst [vmem:[#allocation5] sm:$0xff] %v209_v6 }
 0x222   :  { %214 = vst [vmem:[#allocation5 + $0x8] sm:$0xff] %v210_v7 }
 0x223   :  { %215 = vst [vmem:[#allocation5 + $0x10] sm:$0xff] %v211_v8 }
 0x224   :  { %216 = vst [vmem:[#allocation5 + $0x18] sm:$0xff] %v212_v9 }
 0x225   :  { %227 = dma.vmem_to_hbm [thread:$0]  %s223_s26, 512, %s225_s29, [#allocation4]  }
 0x226   :  { %304 = dma.done.wait [#allocation4], 512  }
 0x227   :  { %305 = vsyncadd [#allocation4], 4294966784 }
 0x228   :  { %232 = vsyncpa [#allocation3], 1 }
 0x229   :  { %233 = vsyncpa [#allocation4], 1 }

</bundles_post_ra>
